<compile_context>
chip_gen: v5e
topology: v5e:2x2
jax: 0.10.0
libtpu: 0.0.40
codegen_flags: <defaults>
</compile_context>

<pallas_src>
import functools

import jax
import jax.numpy as jnp
from jax import lax
from jax.experimental import pallas as pl
from jax.experimental.pallas import tpu as pltpu


# -----------------------------------------------------------------------------
# Model dimensions (synthetic CG module, matching the previous implementation)
# -----------------------------------------------------------------------------
ENC_DIMS = [3, 32, 64]              # per-point shared MLP (Conv1d k=1 equivalents)
GLOB = ENC_DIMS[-1]                 # global feature dim after max-pool
POSE_DIMS = [2 * GLOB, 64, 7]       # quaternion(4) + translation(3)
OL_DIMS = [3 * GLOB, 64, 2]         # [feats | glob_self | glob_other] -> 2 classes

_MAX_TILE = 512                     # row tile (points) — keeps VMEM small on v7x


def _round_up(x, m):
    return ((x + m - 1) // m) * m


def _choose_tile(n):
    return _MAX_TILE if n >= _MAX_TILE else _round_up(n, 8)


def _pad_points(pts, n_pad):
    """Pad the point axis by repeating point 0 (max-pool & slicing stay correct)."""
    B, N, C = pts.shape
    if n_pad == N:
        return pts
    pad = jnp.broadcast_to(pts[:, :1, :], (B, n_pad - N, C))
    return jnp.concatenate([pts, pad], axis=1)


# -----------------------------------------------------------------------------
# Kernel 1: fused per-point encoder MLP + global max-pool
# -----------------------------------------------------------------------------
def _encoder_kernel(pts_ref, w1_ref, b1_ref, w2_ref, b2_ref,
                    feats_ref, glob_ref, max_sc):
    j = pl.program_id(1)

    @pl.when(j == 0)
    def _():
        max_sc[...] = jnp.full_like(max_sc, -jnp.inf)

    x = pts_ref[0]                                                  # (TN, 3) f32
    h = jnp.dot(x, w1_ref[...], preferred_element_type=jnp.float32) + b1_ref[...]
    h = jnp.maximum(h, 0.0)                                         # (TN, 32) f32
    h = jnp.dot(h.astype(jnp.bfloat16), w2_ref[...],
                preferred_element_type=jnp.float32) + b2_ref[...]
    h = jnp.maximum(h, 0.0)                                         # (TN, 64) f32

    feats_ref[0] = h.astype(jnp.bfloat16)
    max_sc[...] = jnp.maximum(max_sc[...], jnp.max(h, axis=0, keepdims=True))

    @pl.when(j == pl.num_programs(1) - 1)
    def _():
        glob_ref[0] = max_sc[...]


def pointnet_encode(params, pts):
    """pts: (B, N, 3) -> feats (B, N_pad, GLOB) bf16 (rows >= N are padding),
       glob (B, GLOB) f32."""
    B, N, _ = pts.shape
    tn = _choose_tile(N)
    n_pad = _round_up(N, tn)
    pts_p = _pad_points(pts.astype(jnp.float32), n_pad)

    (w1, b1), (w2, b2) = params["enc"]
    w1 = w1.astype(jnp.float32)                  # tiny (3, 32) layer stays f32
    w2 = w2.astype(jnp.bfloat16)                 # (32, 64) bf16 for the MXU
    b1 = b1.reshape(1, -1).astype(jnp.float32)
    b2 = b2.reshape(1, -1).astype(jnp.float32)

    feats, glob = pl.pallas_call(
        _encoder_kernel,
        out_shape=(jax.ShapeDtypeStruct((B, n_pad, GLOB), jnp.bfloat16),
                   jax.ShapeDtypeStruct((B, 1, GLOB), jnp.float32)),
        grid=(B, n_pad // tn),
        in_specs=[
            pl.BlockSpec((1, tn, 3), lambda b, j: (b, j, 0)),
            pl.BlockSpec((ENC_DIMS[0], ENC_DIMS[1]), lambda b, j: (0, 0)),
            pl.BlockSpec((1, ENC_DIMS[1]), lambda b, j: (0, 0)),
            pl.BlockSpec((ENC_DIMS[1], GLOB), lambda b, j: (0, 0)),
            pl.BlockSpec((1, GLOB), lambda b, j: (0, 0)),
        ],
        out_specs=(
            pl.BlockSpec((1, tn, GLOB), lambda b, j: (b, j, 0)),
            pl.BlockSpec((1, 1, GLOB), lambda b, j: (b, 0, 0)),
        ),
        scratch_shapes=[pltpu.VMEM((1, GLOB), jnp.float32)],
        compiler_params=pltpu.CompilerParams(
            dimension_semantics=("parallel", "arbitrary")),
    )(pts_p, w1, b1, w2, b2)
    return feats, glob[:, 0, :]


# -----------------------------------------------------------------------------
# Kernel 2: fused overlap head (linear + ReLU + linear + softmax class-1 score)
# -----------------------------------------------------------------------------
def _overlap_kernel(feats_ref, gbias_ref, w0f_ref, w1t_ref, b1_ref,
                    ol_ref, score_ref):
    f = feats_ref[0]                                                # (TN, 64) bf16
    h = jnp.dot(f, w0f_ref[...], preferred_element_type=jnp.float32)
    h = jnp.maximum(h + gbias_ref[0], 0.0)                          # (TN, 64) f32
    # logits emitted transposed so points land on lanes (lane-dense stores):
    # (2, 64) contract dim1 with (TN, 64) dim1  ->  (2, TN)
    lt = lax.dot_general(
        w1t_ref[...], h.astype(jnp.bfloat16),
        dimension_numbers=(((1,), (1,)), ((), ())),
        preferred_element_type=jnp.float32) + b1_ref[...]           # (2, TN)
    ol_ref[0] = lt
    # softmax over the 2-class axis, class 1  ==  sigmoid(l1 - l0)
    score_ref[0] = 1.0 / (1.0 + jnp.exp(lt[0:1, :] - lt[1:2, :]))


def overlap_head(params, feats_pad, glob_self, glob_other, n_valid):
    """feats_pad: (B, N_pad, GLOB) bf16 -> logits (B, 2, n_valid) f32,
       overlap score (B, n_valid) f32."""
    B, n_pad, _ = feats_pad.shape
    tn = _MAX_TILE if n_pad >= _MAX_TILE else n_pad

    (w0, b0), (w1, b1) = params["ol"]
    w0f = w0[:GLOB].astype(jnp.bfloat16)                            # (64, 64)
    w0gs = w0[GLOB:2 * GLOB]                                        # (64, 64) f32
    w0go = w0[2 * GLOB:]                                            # (64, 64) f32
    # Fold the global-feature contribution into a tiny per-batch bias (plain JAX)
    # instead of materializing the (B, N, 192) concat in HBM.
    gbias = (glob_self @ w0gs + glob_other @ w0go + b0)[:, None, :]  # (B, 1, 64)
    w1t = jnp.transpose(w1).astype(jnp.bfloat16)                     # (2, 64)
    b1c = b1.reshape(2, 1).astype(jnp.float32)

    ol, score = pl.pallas_call(
        _overlap_kernel,
        out_shape=(jax.ShapeDtypeStruct((B, 2, n_pad), jnp.float32),
                   jax.ShapeDtypeStruct((B, 1, n_pad), jnp.float32)),
        grid=(B, n_pad // tn),
        in_specs=[
            pl.BlockSpec((1, tn, GLOB), lambda b, j: (b, j, 0)),
            pl.BlockSpec((1, 1, GLOB), lambda b, j: (b, 0, 0)),
            pl.BlockSpec((GLOB, GLOB), lambda b, j: (0, 0)),
            pl.BlockSpec((2, GLOB), lambda b, j: (0, 0)),
            pl.BlockSpec((2, 1), lambda b, j: (0, 0)),
        ],
        out_specs=(
            pl.BlockSpec((1, 2, tn), lambda b, j: (b, 0, j)),
            pl.BlockSpec((1, 1, tn), lambda b, j: (b, 0, j)),
        ),
        compiler_params=pltpu.CompilerParams(
            dimension_semantics=("parallel", "parallel")),
    )(feats_pad, gbias.astype(jnp.float32), w0f, w1t, b1c)
    return ol[:, :, :n_valid], score[:, 0, :n_valid]


# -----------------------------------------------------------------------------
# Tiny glue ops kept in plain JAX (per perf review: launch overhead dominates)
# -----------------------------------------------------------------------------
def batch_transform(src, R, t=None):
    """src: (B, N, 3), R: (B, 3, 3), t: (B, 3) or None -> src @ R^T (+ t)."""
    out = jnp.einsum("bnc,bdc->bnd", src.astype(jnp.float32), R.astype(jnp.float32))
    if t is not None:
        out = out + t[:, None, :]
    return out


def quat_to_rotmat(q):
    """q: (B, 4) (unnormalized) -> (B, 3, 3)."""
    q = q / (jnp.linalg.norm(q, axis=-1, keepdims=True) + 1e-8)
    w, x, y, z = q[:, 0], q[:, 1], q[:, 2], q[:, 3]
    R = jnp.stack([
        1 - 2 * (y * y + z * z), 2 * (x * y - w * z), 2 * (x * z + w * y),
        2 * (x * y + w * z), 1 - 2 * (x * x + z * z), 2 * (y * z - w * x),
        2 * (x * z - w * y), 2 * (y * z + w * x), 1 - 2 * (x * x + y * y),
    ], axis=-1).reshape(-1, 3, 3)
    return R


def pose_head(params, src_glob, tgt_glob):
    h = jnp.concatenate([src_glob, tgt_glob], axis=-1)               # (B, 2*GLOB)
    (w0, b0), (w1, b1) = params["pose"]
    h = jax.nn.relu(h @ w0 + b0)
    return h @ w1 + b1                                               # (B, 7)


# -----------------------------------------------------------------------------
# Parameter setup (deterministic, synthetic)
# -----------------------------------------------------------------------------
def init_params(key):
    params = {}

    def dense(key, cin, cout):
        kw, kb = jax.random.split(key)
        w = jax.random.normal(kw, (cin, cout), jnp.float32) * (1.0 / jnp.sqrt(cin))
        b = jax.random.normal(kb, (cout,), jnp.float32) * 0.01
        return w, b

    keys = jax.random.split(key, 16)
    k = iter(keys)
    params["enc"] = [dense(next(k), ENC_DIMS[i], ENC_DIMS[i + 1])
                     for i in range(len(ENC_DIMS) - 1)]
    params["pose"] = [dense(next(k), POSE_DIMS[i], POSE_DIMS[i + 1])
                      for i in range(len(POSE_DIMS) - 1)]
    params["ol"] = [dense(next(k), OL_DIMS[i], OL_DIMS[i + 1])
                    for i in range(len(OL_DIMS) - 1)]
    return params


# -----------------------------------------------------------------------------
# CG module (coarse alignment + overlap prediction)
# -----------------------------------------------------------------------------
def cg_module(params, src, tgt):
    B, N, _ = src.shape
    M = tgt.shape[1]

    src_feats, src_glob = pointnet_encode(params, src)
    tgt_feats, tgt_glob = pointnet_encode(params, tgt)

    # pose regression head (quaternion + translation) — tiny, plain JAX
    pose = pose_head(params, src_glob, tgt_glob)                     # (B, 7)
    quat = pose[:, :4] + jnp.array([1.0, 0.0, 0.0, 0.0], jnp.float32)[None, :]
    R = quat_to_rotmat(quat)                                         # (B, 3, 3)
    t = pose[:, 4:]                                                  # (B, 3)

    bottom = jnp.tile(jnp.array([[0.0, 0.0, 0.0, 1.0]], jnp.float32)[None],
                      (B, 1, 1))
    T0 = jnp.concatenate(
        [jnp.concatenate([R, t[:, :, None]], axis=-1), bottom], axis=1)

    x_ol, x_ol_score = overlap_head(params, src_feats, src_glob, tgt_glob, N)
    y_ol, y_ol_score = overlap_head(params, tgt_feats, tgt_glob, src_glob, M)
    return T0, x_ol, y_ol, x_ol_score, y_ol_score


# -----------------------------------------------------------------------------
# ROPNet forward (coarse stage)
# -----------------------------------------------------------------------------
@functools.partial(jax.jit, static_argnames=("use_ppf",))
def ropnet_forward(params, src, tgt, use_ppf=True):
    """src: (B, N, 3|6), tgt: (B, M, 3|6) -> results dict (stage-0)."""
    C = src.shape[-1]
    normal_src = normal_tgt = None
    if use_ppf and C == 6:
        normal_src = src[..., 3:]
        normal_tgt = tgt[..., 3:]
    src = src[..., :3]
    src_raw = src
    tgt = tgt[..., :3]

    T0, x_ol, y_ol, x_ol_score, y_ol_score = cg_module(params, src, tgt)
    R, t = T0[:, :3, :3], T0[:, :3, 3]

    src_t = batch_transform(src_raw, R, t)
    normal_src_t = None
    if normal_src is not None:
        normal_src_t = batch_transform(normal_src, R)                # rotation only

    # TODO(synk): stage-1 refinement (median-quadrant split via torch.median /
    #             torch.nonzero, TFMRModule, weighted_icp SVD) is data-dependent /
    #             unsupplied and is not reproduced here.

    results = {
        "pred_Ts": [T0],
        "pred_src": [src_t],
        "x_ol": x_ol,
        "y_ol": y_ol,
        "x_ol_score": x_ol_score,
        "y_ol_score": y_ol_score,
        "normal_src_t": normal_src_t,
        "normal_tgt": normal_tgt,
    }
    return results


# -----------------------------------------------------------------------------
# Main
# -----------------------------------------------------------------------------
if __name__ == "__main__":
    B, N, M, C = 2, 16, 16, 6

    key = jax.random.PRNGKey(0)
    k_params, k_src, k_tgt, k_nsrc, k_ntgt = jax.random.split(key, 5)

    params = init_params(k_params)

    src_xyz = jax.random.normal(k_src, (B, N, 3), jnp.float32)
    tgt_xyz = jax.random.normal(k_tgt, (B, M, 3), jnp.float32)
    src_nrm = jax.random.normal(k_nsrc, (B, N, 3), jnp.float32)
    tgt_nrm = jax.random.normal(k_ntgt, (B, M, 3), jnp.float32)
    src_nrm = src_nrm / jnp.linalg.norm(src_nrm, axis=-1, keepdims=True)
    tgt_nrm = tgt_nrm / jnp.linalg.norm(tgt_nrm, axis=-1, keepdims=True)

    src = jnp.concatenate([src_xyz, src_nrm], axis=-1)   # (B, N, 6)
    tgt = jnp.concatenate([tgt_xyz, tgt_nrm], axis=-1)   # (B, M, 6)

    results = ropnet_forward(params, src, tgt, use_ppf=True)

    jax.block_until_ready(results["pred_src"][0])
    jax.block_until_ready(results["x_ol"])
    jax.block_until_ready(results["y_ol"])
    jax.block_until_ready(results["x_ol_score"])
    jax.block_until_ready(results["y_ol_score"])
    jax.block_until_ready(results["pred_Ts"][0])

    assert results["pred_Ts"][0].shape == (B, 4, 4)
    assert results["pred_src"][0].shape == (B, N, 3)
    assert results["x_ol"].shape == (B, 2, N)
    assert results["y_ol"].shape == (B, 2, M)
    assert results["x_ol_score"].shape == (B, N)
    assert results["y_ol_score"].shape == (B, M)

    print("KERNEL_OK")
</pallas_src>

<mosaic_0001>
module attributes {stable_mosaic.version = 11 : i64} {
  func.func @_encoder_kernel(%arg0: i32, %arg1: i32, %arg2: memref<1x16x3xf32, #tpu.memory_space<vmem>>, %arg3: memref<3x32xf32, #tpu.memory_space<vmem>>, %arg4: memref<1x32xf32, #tpu.memory_space<vmem>>, %arg5: memref<32x64xbf16, #tpu.memory_space<vmem>>, %arg6: memref<1x64xf32, #tpu.memory_space<vmem>>, %arg7: memref<1x16x64xbf16, #tpu.memory_space<vmem>>, %arg8: memref<1x1x64xf32, #tpu.memory_space<vmem>>, %arg9: memref<1x64xf32, #tpu.memory_space<vmem>>) attributes {dimension_semantics = [#tpu.dimension_semantics<parallel>, #tpu.dimension_semantics<arbitrary>], iteration_bounds = array<i64: 2, 1>, scalar_prefetch = 0 : i64, scratch_operands = 1 : i64, tpu.core_type = #tpu.core_type<tc>, window_params = [{transform_indices = @transform_0, window_bounds = array<i64: 1, 16, 3>}, {pipeline_mode = #tpu.pipeline_mode<synchronous>, transform_indices = @transform_1, window_bounds = array<i64: 3, 32>}, {pipeline_mode = #tpu.pipeline_mode<synchronous>, transform_indices = @transform_2, window_bounds = array<i64: 1, 32>}, {pipeline_mode = #tpu.pipeline_mode<synchronous>, transform_indices = @transform_3, window_bounds = array<i64: 32, 64>}, {pipeline_mode = #tpu.pipeline_mode<synchronous>, transform_indices = @transform_4, window_bounds = array<i64: 1, 64>}, {transform_indices = @transform_5, window_bounds = array<i64: 1, 16, 64>}, {transform_indices = @transform_6, window_bounds = array<i64: 1, 1, 64>}]} {
    %c0_i32 = arith.constant 0 : i32
    %0 = arith.cmpi eq, %arg1, %c0_i32 : i32
    %1 = arith.extui %0 : i1 to i32
    %c0_i32_0 = arith.constant 0 : i32
    %2 = arith.cmpi ne, %1, %c0_i32_0 : i32
    scf.if %2 {
      %cst_24 = arith.constant 0xFF800000 : f32
      %32 = vector.broadcast %cst_24 : f32 to vector<1x64xf32>
      %c0_25 = arith.constant 0 : index
      %c0_26 = arith.constant 0 : index
      %33 = vector.load %arg9[%c0_25, %c0_26] : memref<1x64xf32, #tpu.memory_space<vmem>>, vector<1x64xf32>
      tpu.vector_store %arg9[%c0_25, %c0_26], %32 {strides = array<i32>} : memref<1x64xf32, #tpu.memory_space<vmem>>, vector<1x64xf32>,
    } else {
    }
    %c0 = arith.constant 0 : index
    %c0_1 = arith.constant 0 : index
    %c0_2 = arith.constant 0 : index
    %3 = vector.load %arg2[%c0, %c0_1, %c0_2] : memref<1x16x3xf32, #tpu.memory_space<vmem>>, vector<1x16x3xf32>
    %4 = vector.shape_cast %3 : vector<1x16x3xf32> to vector<16x3xf32>
    %c0_3 = arith.constant 0 : index
    %c0_4 = arith.constant 0 : index
    %5 = vector.load %arg3[%c0_3, %c0_4] : memref<3x32xf32, #tpu.memory_space<vmem>>, vector<3x32xf32>
    %cst = arith.constant dense<0.000000e+00> : vector<16x32xf32>
    %6 = tpu.matmul %4, %5, %cst {dimension_numbers = #tpu.dot_dimension_numbers<[1], [0], [0], [1], [0, 0, 1, 1], [], []>} : vector<16x3xf32>, vector<3x32xf32>, vector<16x32xf32> -> vector<16x32xf32>
    %c0_5 = arith.constant 0 : index
    %c0_6 = arith.constant 0 : index
    %7 = vector.load %arg4[%c0_5, %c0_6] : memref<1x32xf32, #tpu.memory_space<vmem>>, vector<1x32xf32>
    %8 = vector.broadcast %7 : vector<1x32xf32> to vector<16x32xf32>
    %9 = arith.addf %6, %8 : vector<16x32xf32>
    %cst_7 = arith.constant 0.000000e+00 : f32
    %10 = vector.broadcast %cst_7 : f32 to vector<16x32xf32>
    %11 = arith.maximumf %9, %10 : vector<16x32xf32>
    %12 = arith.truncf %11 : vector<16x32xf32> to vector<16x32xbf16>
    %c0_8 = arith.constant 0 : index
    %c0_9 = arith.constant 0 : index
    %13 = vector.load %arg5[%c0_8, %c0_9] : memref<32x64xbf16, #tpu.memory_space<vmem>>, vector<32x64xbf16>
    %cst_10 = arith.constant dense<0.000000e+00> : vector<16x64xf32>
    %14 = tpu.matmul %12, %13, %cst_10 {dimension_numbers = #tpu.dot_dimension_numbers<[1], [0], [0], [1], [0, 0, 1, 1], [], []>} : vector<16x32xbf16>, vector<32x64xbf16>, vector<16x64xf32> -> vector<16x64xf32>
    %c0_11 = arith.constant 0 : index
    %c0_12 = arith.constant 0 : index
    %15 = vector.load %arg6[%c0_11, %c0_12] : memref<1x64xf32, #tpu.memory_space<vmem>>, vector<1x64xf32>
    %16 = vector.broadcast %15 : vector<1x64xf32> to vector<16x64xf32>
    %17 = arith.addf %14, %16 : vector<16x64xf32>
    %cst_13 = arith.constant 0.000000e+00 : f32
    %18 = vector.broadcast %cst_13 : f32 to vector<16x64xf32>
    %19 = arith.maximumf %17, %18 : vector<16x64xf32>
    %20 = arith.truncf %19 : vector<16x64xf32> to vector<16x64xbf16>
    %c0_14 = arith.constant 0 : index
    %c0_15 = arith.constant 0 : index
    %c0_16 = arith.constant 0 : index
    %21 = vector.load %arg7[%c0_14, %c0_15, %c0_16] : memref<1x16x64xbf16, #tpu.memory_space<vmem>>, vector<1x16x64xbf16>
    %22 = vector.shape_cast %21 : vector<1x16x64xbf16> to vector<16x64xbf16>
    %23 = vector.shape_cast %20 : vector<16x64xbf16> to vector<1x16x64xbf16>
    tpu.vector_store %arg7[%c0_14, %c0_15, %c0_16], %23 {strides = array<i32>} : memref<1x16x64xbf16, #tpu.memory_space<vmem>>, vector<1x16x64xbf16>,
    %c0_17 = arith.constant 0 : index
    %c0_18 = arith.constant 0 : index
    %24 = vector.load %arg9[%c0_17, %c0_18] : memref<1x64xf32, #tpu.memory_space<vmem>>, vector<1x64xf32>
    %cst_19 = arith.constant dense<0xFF800000> : vector<64xf32>
    %25 = vector.multi_reduction <maximumf>, %19, %cst_19 [0] : vector<16x64xf32> to vector<64xf32>
    %26 = vector.shape_cast %25 : vector<64xf32> to vector<1x64xf32>
    %27 = arith.maximumf %24, %26 : vector<1x64xf32>
    %c0_20 = arith.constant 0 : index
    %c0_21 = arith.constant 0 : index
    %28 = vector.load %arg9[%c0_20, %c0_21] : memref<1x64xf32, #tpu.memory_space<vmem>>, vector<1x64xf32>
    tpu.vector_store %arg9[%c0_20, %c0_21], %27 {strides = array<i32>} : memref<1x64xf32, #tpu.memory_space<vmem>>, vector<1x64xf32>,
    %c0_i32_22 = arith.constant 0 : i32
    %29 = arith.cmpi eq, %arg1, %c0_i32_22 : i32
    %30 = arith.extui %29 : i1 to i32
    %c0_i32_23 = arith.constant 0 : i32
    %31 = arith.cmpi ne, %30, %c0_i32_23 : i32
    scf.if %31 {
      %c0_24 = arith.constant 0 : index
      %c0_25 = arith.constant 0 : index
      %32 = vector.load %arg9[%c0_24, %c0_25] : memref<1x64xf32, #tpu.memory_space<vmem>>, vector<1x64xf32>
      %c0_26 = arith.constant 0 : index
      %c0_27 = arith.constant 0 : index
      %c0_28 = arith.constant 0 : index
      %33 = vector.load %arg8[%c0_26, %c0_27, %c0_28] : memref<1x1x64xf32, #tpu.memory_space<vmem>>, vector<1x1x64xf32>
      %34 = vector.shape_cast %33 : vector<1x1x64xf32> to vector<1x64xf32>
      %35 = vector.shape_cast %32 : vector<1x64xf32> to vector<1x1x64xf32>
      tpu.vector_store %arg8[%c0_26, %c0_27, %c0_28], %35 {strides = array<i32>} : memref<1x1x64xf32, #tpu.memory_space<vmem>>, vector<1x1x64xf32>,
    } else {
    }
    return
  }
  func.func @transform_0(%arg0: i32, %arg1: i32) -> (i32, i32, i32) {
    %c0_i32 = arith.constant 0 : i32
    %c0_i32_0 = arith.constant 0 : i32
    return %arg0, %arg1, %c0_i32 : i32, i32, i32
  }
  func.func @transform_1(%arg0: i32, %arg1: i32) -> (i32, i32) {
    %c0_i32 = arith.constant 0 : i32
    %c0_i32_0 = arith.constant 0 : i32
    %c0_i32_1 = arith.constant 0 : i32
    return %c0_i32, %c0_i32_0 : i32, i32
  }
  func.func @transform_2(%arg0: i32, %arg1: i32) -> (i32, i32) {
    %c0_i32 = arith.constant 0 : i32
    %c0_i32_0 = arith.constant 0 : i32
    %c0_i32_1 = arith.constant 0 : i32
    return %c0_i32, %c0_i32_0 : i32, i32
  }
  func.func @transform_3(%arg0: i32, %arg1: i32) -> (i32, i32) {
    %c0_i32 = arith.constant 0 : i32
    %c0_i32_0 = arith.constant 0 : i32
    %c0_i32_1 = arith.constant 0 : i32
    return %c0_i32, %c0_i32_0 : i32, i32
  }
  func.func @transform_4(%arg0: i32, %arg1: i32) -> (i32, i32) {
    %c0_i32 = arith.constant 0 : i32
    %c0_i32_0 = arith.constant 0 : i32
    %c0_i32_1 = arith.constant 0 : i32
    return %c0_i32, %c0_i32_0 : i32, i32
  }
  func.func @transform_5(%arg0: i32, %arg1: i32) -> (i32, i32, i32) {
    %c0_i32 = arith.constant 0 : i32
    %c0_i32_0 = arith.constant 0 : i32
    return %arg0, %arg1, %c0_i32 : i32, i32, i32
  }
  func.func @transform_6(%arg0: i32, %arg1: i32) -> (i32, i32, i32) {
    %c0_i32 = arith.constant 0 : i32
    %c0_i32_0 = arith.constant 0 : i32
    %c0_i32_1 = arith.constant 0 : i32
    return %arg0, %c0_i32, %c0_i32_0 : i32, i32, i32
  }
}

module attributes {stable_mosaic.version = 11 : i64} {
  func.func @_overlap_kernel(%arg0: i32, %arg1: i32, %arg2: memref<1x16x64xbf16, #tpu.memory_space<vmem>>, %arg3: memref<1x1x64xf32, #tpu.memory_space<vmem>>, %arg4: memref<64x64xbf16, #tpu.memory_space<vmem>>, %arg5: memref<2x64xbf16, #tpu.memory_space<vmem>>, %arg6: memref<2x1xf32, #tpu.memory_space<vmem>>, %arg7: memref<1x2x16xf32, #tpu.memory_space<vmem>>, %arg8: memref<1x1x16xf32, #tpu.memory_space<vmem>>) attributes {dimension_semantics = [#tpu.dimension_semantics<parallel>, #tpu.dimension_semantics<parallel>], iteration_bounds = array<i64: 2, 1>, scalar_prefetch = 0 : i64, scratch_operands = 0 : i64, tpu.core_type = #tpu.core_type<tc>, window_params = [{transform_indices = @transform_0, window_bounds = array<i64: 1, 16, 64>}, {transform_indices = @transform_1, window_bounds = array<i64: 1, 1, 64>}, {pipeline_mode = #tpu.pipeline_mode<synchronous>, transform_indices = @transform_2, window_bounds = array<i64: 64, 64>}, {pipeline_mode = #tpu.pipeline_mode<synchronous>, transform_indices = @transform_3, window_bounds = array<i64: 2, 64>}, {pipeline_mode = #tpu.pipeline_mode<synchronous>, transform_indices = @transform_4, window_bounds = array<i64: 2, 1>}, {transform_indices = @transform_5, window_bounds = array<i64: 1, 2, 16>}, {transform_indices = @transform_6, window_bounds = array<i64: 1, 1, 16>}]} {
    %c0 = arith.constant 0 : index
    %c0_0 = arith.constant 0 : index
    %c0_1 = arith.constant 0 : index
    %0 = vector.load %arg2[%c0, %c0_0, %c0_1] : memref<1x16x64xbf16, #tpu.memory_space<vmem>>, vector<1x16x64xbf16>
    %1 = vector.shape_cast %0 : vector<1x16x64xbf16> to vector<16x64xbf16>
    %c0_2 = arith.constant 0 : index
    %c0_3 = arith.constant 0 : index
    %2 = vector.load %arg4[%c0_2, %c0_3] : memref<64x64xbf16, #tpu.memory_space<vmem>>, vector<64x64xbf16>
    %cst = arith.constant dense<0.000000e+00> : vector<16x64xf32>
    %3 = tpu.matmul %1, %2, %cst {dimension_numbers = #tpu.dot_dimension_numbers<[1], [0], [0], [1], [0, 0, 1, 1], [], []>} : vector<16x64xbf16>, vector<64x64xbf16>, vector<16x64xf32> -> vector<16x64xf32>
    %c0_4 = arith.constant 0 : index
    %c0_5 = arith.constant 0 : index
    %c0_6 = arith.constant 0 : index
    %4 = vector.load %arg3[%c0_4, %c0_5, %c0_6] : memref<1x1x64xf32, #tpu.memory_space<vmem>>, vector<1x1x64xf32>
    %5 = vector.shape_cast %4 : vector<1x1x64xf32> to vector<1x64xf32>
    %6 = vector.broadcast %5 : vector<1x64xf32> to vector<16x64xf32>
    %7 = arith.addf %3, %6 : vector<16x64xf32>
    %cst_7 = arith.constant 0.000000e+00 : f32
    %8 = vector.broadcast %cst_7 : f32 to vector<16x64xf32>
    %9 = arith.maximumf %7, %8 : vector<16x64xf32>
    %c0_8 = arith.constant 0 : index
    %c0_9 = arith.constant 0 : index
    %10 = vector.load %arg5[%c0_8, %c0_9] : memref<2x64xbf16, #tpu.memory_space<vmem>>, vector<2x64xbf16>
    %11 = arith.truncf %9 : vector<16x64xf32> to vector<16x64xbf16>
    %cst_10 = arith.constant dense<0.000000e+00> : vector<2x16xf32>
    %12 = tpu.matmul %10, %11, %cst_10 {dimension_numbers = #tpu.dot_dimension_numbers<[1], [1], [0], [0], [0, 0, 1, 0], [], []>} : vector<2x64xbf16>, vector<16x64xbf16>, vector<2x16xf32> -> vector<2x16xf32>
    %c0_11 = arith.constant 0 : index
    %c0_12 = arith.constant 0 : index
    %13 = vector.load %arg6[%c0_11, %c0_12] : memref<2x1xf32, #tpu.memory_space<vmem>>, vector<2x1xf32>
    %14 = vector.broadcast %13 : vector<2x1xf32> to vector<2x16xf32>
    %15 = arith.addf %12, %14 : vector<2x16xf32>
    %c0_13 = arith.constant 0 : index
    %c0_14 = arith.constant 0 : index
    %c0_15 = arith.constant 0 : index
    %16 = vector.load %arg7[%c0_13, %c0_14, %c0_15] : memref<1x2x16xf32, #tpu.memory_space<vmem>>, vector<1x2x16xf32>
    %17 = vector.shape_cast %16 : vector<1x2x16xf32> to vector<2x16xf32>
    %18 = vector.shape_cast %15 : vector<2x16xf32> to vector<1x2x16xf32>
    tpu.vector_store %arg7[%c0_13, %c0_14, %c0_15], %18 {strides = array<i32>} : memref<1x2x16xf32, #tpu.memory_space<vmem>>, vector<1x2x16xf32>,
    %19 = vector.extract_strided_slice %15 {offsets = [0, 0], sizes = [1, 16], strides = [1, 1]} : vector<2x16xf32> to vector<1x16xf32>
    %20 = vector.extract_strided_slice %15 {offsets = [1, 0], sizes = [1, 16], strides = [1, 1]} : vector<2x16xf32> to vector<1x16xf32>
    %21 = arith.subf %19, %20 : vector<1x16xf32>
    %22 = math.exp %21 : vector<1x16xf32>
    %cst_16 = arith.constant 1.000000e+00 : f32
    %23 = vector.broadcast %cst_16 : f32 to vector<1x16xf32>
    %24 = arith.addf %23, %22 : vector<1x16xf32>
    %cst_17 = arith.constant 1.000000e+00 : f32
    %25 = vector.broadcast %cst_17 : f32 to vector<1x16xf32>
    %26 = arith.divf %25, %24 : vector<1x16xf32>
    %c0_18 = arith.constant 0 : index
    %c0_19 = arith.constant 0 : index
    %c0_20 = arith.constant 0 : index
    %27 = vector.load %arg8[%c0_18, %c0_19, %c0_20] : memref<1x1x16xf32, #tpu.memory_space<vmem>>, vector<1x1x16xf32>
    %28 = vector.shape_cast %27 : vector<1x1x16xf32> to vector<1x16xf32>
    %29 = vector.shape_cast %26 : vector<1x16xf32> to vector<1x1x16xf32>
    tpu.vector_store %arg8[%c0_18, %c0_19, %c0_20], %29 {strides = array<i32>} : memref<1x1x16xf32, #tpu.memory_space<vmem>>, vector<1x1x16xf32>,
    return
  }
  func.func @transform_0(%arg0: i32, %arg1: i32) -> (i32, i32, i32) {
    %c0_i32 = arith.constant 0 : i32
    %c0_i32_0 = arith.constant 0 : i32
    return %arg0, %arg1, %c0_i32 : i32, i32, i32
  }
  func.func @transform_1(%arg0: i32, %arg1: i32) -> (i32, i32, i32) {
    %c0_i32 = arith.constant 0 : i32
    %c0_i32_0 = arith.constant 0 : i32
    %c0_i32_1 = arith.constant 0 : i32
    return %arg0, %c0_i32, %c0_i32_0 : i32, i32, i32
  }
  func.func @transform_2(%arg0: i32, %arg1: i32) -> (i32, i32) {
    %c0_i32 = arith.constant 0 : i32
    %c0_i32_0 = arith.constant 0 : i32
    %c0_i32_1 = arith.constant 0 : i32
    return %c0_i32, %c0_i32_0 : i32, i32
  }
  func.func @transform_3(%arg0: i32, %arg1: i32) -> (i32, i32) {
    %c0_i32 = arith.constant 0 : i32
    %c0_i32_0 = arith.constant 0 : i32
    %c0_i32_1 = arith.constant 0 : i32
    return %c0_i32, %c0_i32_0 : i32, i32
  }
  func.func @transform_4(%arg0: i32, %arg1: i32) -> (i32, i32) {
    %c0_i32 = arith.constant 0 : i32
    %c0_i32_0 = arith.constant 0 : i32
    %c0_i32_1 = arith.constant 0 : i32
    return %c0_i32, %c0_i32_0 : i32, i32
  }
  func.func @transform_5(%arg0: i32, %arg1: i32) -> (i32, i32, i32) {
    %c0_i32 = arith.constant 0 : i32
    %c0_i32_0 = arith.constant 0 : i32
    return %arg0, %c0_i32, %arg1 : i32, i32, i32
  }
  func.func @transform_6(%arg0: i32, %arg1: i32) -> (i32, i32, i32) {
    %c0_i32 = arith.constant 0 : i32
    %c0_i32_0 = arith.constant 0 : i32
    return %arg0, %c0_i32, %arg1 : i32, i32, i32
  }
}

</mosaic_0001>

<bundles_post_ra>
// kernel: ropnet_forward.5
= control target key start
LH: loop header
LB: loop body
LE: loop exit
PB: predicated region body
PF: predicated region fallthrough
CT: control target
= control target key end

     0   :  { %s641_s21 = smov 0   ;;  %s643_s22 = smov 0   ;;  %s700_s0 = inlined_call_operand.vmem [shape: f32[2,16,3], index: 0, kind: input, shape index: {}]   ;;  %s701_s1 = inlined_call_operand.vmem [shape: f32[3,32], index: 1, kind: input, shape index: {}]   ;;  %s702_s2 = inlined_call_operand.vmem [shape: f32[1,32], index: 2, kind: input, shape index: {}]   ;;  %s703_s3 = inlined_call_operand.vmem [shape: bf16[32,64], index: 3, kind: input, shape index: {}]   ;;  %s704_s4 = inlined_call_operand.vmem [shape: f32[1,64], index: 4, kind: input, shape index: {}]   ;;  %s705_s5 = inlined_call_operand.vmem [shape: bf16[2,16,64], index: 5, kind: output, shape index: {0}]   ;;  %s706_s6 = inlined_call_operand.vmem [shape: f32[2,1,64], index: 6, kind: output, shape index: {1}]  }
   0x1   :  { %s645_s23 = smov 0  }
   0x2 LB: > { %s29_s24 = sadd.s32 1, %s599_s22  ;;  %p531_p0 = scmp.ge.s32.totalorder %s603_s23, 1  ;;  %s603_s23 = sphi %s645_s23, %s17_s23   ;;  %s599_s22 = sphi %s643_s22, %s708_s22   ;;  %s595_s21 = sphi %s641_s21, %s707_s21  }
   0x3   : > { %p31_p1 = scmp.ge.s32.totalorder %s29_s24, 2  ;;  %p236_p2 = scmp.lt.s32.totalorder %s603_s23, 3 }
   0x5   : > { %s710_s24 = smov (%p31_p1, %s29_s24), 0  ;;  %p237_p3 = pnand %p531_p0, %p236_p2 }
   0x6   : > { %p278_p4 = scmp.lt.s32.totalorder (!%p237_p3), %s595_s21, 1 }
   0x7   : > { %240 = sbr.rel (%p237_p3) target bundleno = 320 (0x140), region = 40 }
   0xc   : > { %v309_v0 = vld [vmem:[%s701_s1] sm:$0x7]  ;;  %vm321_vm0 = vcmask 1042432   ;;  %s712_s21 = smov (!%p278_p4, %s595_s21), 1  ;;  %vm314_vm1 = vcmask 23552   ;;  %v553_v3 = vld [vmem:[%s703_s3 + $0x8] sm:$0xff] }
   0xd   : > { %536 = vmatpush.msk.msra.mxu0 %vm321_vm0, %v309_v0  ;;  %s550_s27 = sshll.u32 %s712_s21, 4  ;;  %381 = vmatpush.bf16.msra.mxu1 %v553_v3  ;;  %v552_v4 = vld [vmem:[%s703_s3] sm:$0xff]  ;;  %vm371_vm2 = vcmask 261120   ;;  %vm305_vm3 = vcmask 516096   ;;  %v605_v13 = vmov -inf   ;;  %s551_s15 = sshll.u32 %s712_s21, 3 }
   0xe   : > { %s285_s30 = scalar_lea.vmem %s700_s0, %s550_s27  ;;  %v579_v6 = vld [vmem:[%s702_s2] ss:$0 sm:$0xff]  ;;  %306 = vst.msk [vmem:[#allocation2] sm:$0x1] %vm305_vm3, %v605_v13  ;;  %s295_s18 = scalar_lea.vmem %s705_s5, %s551_s15  ;;  %vm393_vm4 = vcmask 519168   ;;  %vm397_vm5 = vcmask 523264  }
   0xf   : > { %v307_v1 = vld [vmem:[%s285_s30] sm:$0xff]  ;;  %v308_v2 = vld [vmem:[%s285_s30 + $0x8] sm:$0xff]  ;;  %s299_s25 = scalar_lea.vmem %s706_s6, %s712_s21 }
  0x10   : > { %537 = vmatmul.msk.f32.vlgmr.msra.gmra.mxu0 %vm314_vm1, %v307_v1  ;;  %v580_v14 = vld [vmem:[%s704_s4] ss:$0 sm:$0xff] }
  0x11   : > { %382 = vmatpush.bf16.msra.mxu1 %v552_v4 }
  0x15   : > { %v396_v31 = vld [vmem:[#allocation2] sm:$0x1] }
  0x18   : > { %538 = vmatmul.msk.f32.gmra.mxu0 %vm314_vm1, %v308_v2 }
  0x8d   : > { %v342_v5 = vpop.f32.mrf.mxu0 }
  0x8e   : > { %v343_v7 = vadd.f32 %v579_v6, %v342_v5 }
  0x90   : > { %v348_v10 = vmax.f32 %v343_v7, 0.0 }
  0x95   : > { %v345_v8 = vpop.f32.mrf.mxu0 }
  0x96   : > { %v346_v9 = vadd.f32 %v579_v6, %v345_v8 }
  0x98   : > { %v349_v11 = vmax.f32 %v346_v9, 0.0 }
  0x9a   : > { %v350_v12 = vpack.c.bf16 %v349_v11, %v348_v10 }
  0x9c   : > { %547 = vmatmul.msk.bf16.vlgmr.msra.gmra.mxu1 %vm371_vm2, %v350_v12 }
 0x119   : > { %v384_v15 = vpop.f32.mrf.mxu1 }
 0x11a   : > { %v385_v16 = vadd.f32 %v580_v14, %v384_v15 }
 0x11c   : > { %v389_v17 = vmax.f32 %v385_v16, 0.0 }
 0x11e   : > { %v391_v18 = vpack.c.bf16 %v389_v17, %v389_v17  ;;  %v398_v22 = vsel %vm397_vm5, %v389_v17, -inf }
 0x120   : > { %394 = vst.msk [vmem:[%s295_s18] sm:$0xf] %vm393_vm4, %v391_v18 }
 0x121   : > { %v386_v19 = vpop.f32.mrf.mxu1 }
 0x122   : > { %v387_v20 = vadd.f32 %v580_v14, %v386_v19 }
 0x124   : > { %v390_v21 = vmax.f32 %v387_v20, 0.0 }
 0x126   : > { %v392_v23 = vpack.c.bf16 %v390_v21, %v390_v21  ;;  %v399_v24 = vsel %vm397_vm5, %v390_v21, -inf }
 0x127   : > { %v400_v25 = vmax.f32 %v398_v22, %v399_v24 }
 0x128   : > { %395 = vst.msk [vmem:[%s295_s18 + $0x4] sm:$0xf] %vm393_vm4, %v392_v23 }
 0x129   : > { %v401_v26 = vrot.slane %v400_v25, 4 }
 0x12b   : > { %v402_v27 = vmax.f32 %v400_v25, %v401_v26 }
 0x12d   : > { %v403_v28 = vrot.slane %v402_v27, 2 }
 0x12f   : > { %v404_v29 = vmax.f32 %v402_v27, %v403_v28 }
 0x131   : > { %v405_v30 = vrot.slane %v404_v29, 1 }
 0x133   : > { %v406_v32 = vmax.f32 %v404_v29, %v405_v30 }
 0x135   : > { %v407_v33 = vmax.f32 %v396_v31, %v406_v32 }
 0x137   : > { %409 = vst.msk [vmem:[#allocation2] sm:$0x1] %vm305_vm3, %v407_v33 }
 0x13e   : > { %v413_v34 = vld [vmem:[#allocation2] sm:$0x1] }
 0x13f   : > { %414 = vst.msk [vmem:[%s299_s25] sm:$0x1] %vm305_vm3, %v413_v34 }
 0x140 PF: > { %s17_s23 = sadd.s32 1, %s603_s23   ;;  %s707_s21 = smov %s599_s22 }
 0x141   : > { %p14_p5 = scmp.ge.s32.totalorder %s17_s23, 4   ;;  %s708_s22 = smov %s710_s24 }
 0x143   :  { %16 = sbr.rel (!%p14_p5) target bundleno = 2 (0x2), region = 90 }

// kernel: ropnet_forward.6
= control target key start
LH: loop header
LB: loop body
LE: loop exit
PB: predicated region body
PF: predicated region fallthrough
CT: control target
= control target key end

     0   :  { %12 = vsyncpa [#allocation3], 0  ;;  %s966_s0 = inlined_call_operand.vmem [shape: bf16[2,16,64], index: 0, kind: input, shape index: {}]   ;;  %s967_s1 = inlined_call_operand.vmem [shape: f32[2,1,64], index: 1, kind: input, shape index: {}]   ;;  %s968_s2 = inlined_call_operand.vmem [shape: bf16[64,64], index: 2, kind: input, shape index: {}]   ;;  %s969_s3 = inlined_call_operand.vmem [shape: bf16[2,64], index: 3, kind: input, shape index: {}]   ;;  %s970_s4 = inlined_call_operand.vmem [shape: f32[2,1], index: 4, kind: input, shape index: {}]   ;;  %s971_s5 = inlined_call_operand.hbm [shape: f32[2,2,16], index: 5, kind: output, shape index: {0}]   ;;  %s972_s6 = inlined_call_operand.hbm [shape: f32[2,1,16], index: 6, kind: output, shape index: {1}]  }
   0x1   :  { %14 = vsyncpa [#allocation3 + $0x1], 0 }
   0x2   :  { %15 = vsyncpa [#allocation5], 0 }
   0x3   :  { %17 = vsyncpa [#allocation5 + $0x1], 0  ;;  %s825_s21 = smov 0   ;;  %s827_s22 = smov 0  }
   0x4   :  { %s829_s23 = smov 0   ;;  %s831_s24 = smov 0  }
   0x5   :  { %s833_s25 = smov 0   ;;  %s835_s26 = smov 0  }
   0x6 LB: > { %s570_s27 = sadd.s32 4294967295, %s787_s26   ;;  %s571_s28 = sadd.s32 4294967294, %s787_s26   ;;  %s787_s26 = sphi %s835_s26, %s23_s26   ;;  %s783_s25 = sphi %s833_s25, %s979_s25   ;;  %s779_s24 = sphi %s831_s24, %s978_s24   ;;  %s775_s23 = sphi %s829_s23, %s977_s23   ;;  %s771_s22 = sphi %s827_s22, %s976_s22   ;;  %s767_s21 = sphi %s825_s21, %s975_s21  }
   0x7   : > { %s35_s29 = sadd.s32 1, %s783_s25  ;;  %s161_s30 = sadd.s32 1, %s775_s23 }
   0x8   : > { %p37_p0 = scmp.ge.s32.totalorder %s35_s29, 2  ;;  %p171_p1 = scmp.ne.s32.totalorder %s775_s23, %s771_s22 }
   0x9   : > { %p172_p2 = scmp.eq.s32.totalorder %s570_s27, 1  ;;  %p177_p3 = scmp.ne.s32.totalorder %s771_s22, %s767_s21 }
   0xa   : > { %s981_s29 = smov (%p37_p0, %s35_s29), 0  ;;  %p178_p5 = scmp.eq.s32.totalorder %s571_s28, 1 }
   0xb   : > { %p865_p4 = por %p172_p2, %p171_p1  ;;  %s156_s8 = ssub.s32 %s783_s25, %s981_s29 }
   0xc   : > { %p574_p6 = scmp.ge.s32.totalorder %s787_s26, 1  ;;  %p159_p7 = scmp.eq.s32.totalorder %s156_s8, 0 }
   0xd   : > { %p872_p8 = por %p178_p5, %p177_p3  ;;  %p252_p9 = scmp.lt.s32.totalorder %s787_s26, 3 }
   0xe   : > { %s878_s10 = scalar_select %p159_p7, %s775_s23, %s161_s30  }
   0xf   : > { %p253_p10 = pnand %p574_p6, %p252_p9 }
  0x10   : > { %p294_p11 = scmp.lt.s32.totalorder (!%p253_p10), %s779_s24, 1  ;;  %s910_s17 = sand.u32 (!%p253_p10), 1, %s771_s22  }
  0x11   : > { %256 = sbr.rel (%p253_p10) target bundleno = 349 (0x15d), region = 40  ;;  %s575_s19 = sshll.u32 (!%p253_p10), %s910_s17, 1 }
  0x12   : > { %s286_s30 = scalar_lea.vmem (!%p253_p10), [#allocation2], %s575_s19 }
  0x13   : > { %s441_s8 = sshll.u32 (!%p253_p10), %s286_s30, 4  ;;  %s442_s8 = int_to_ptr.vmem [resolvable:$true] %s441_s8 }
  0x16   : > { %v609_v0 = vld [vmem:[%s968_s2 + $0x18] sm:$0xff]  ;;  %v608_v1 = vld [vmem:[%s968_s2 + $0x10] sm:$0xff]  ;;  %s295_s15 = scalar_select %p294_p11, %s779_s24, 1  ;;  %v607_v2 = vld [vmem:[%s968_s2 + $0x8] sm:$0xff]  ;;  %vm350_vm0 = vcmask 523264   ;;  %v789_v6 = vmov 0  }
  0x17   : > { %358 = vmatpush.bf16.msra.mxu0 %v609_v0  ;;  %v606_v3 = vld [vmem:[%s968_s2] sm:$0xff]  ;;  %671 = vset.pattern.permute.xlu0 %v789_v6  ;;  %vm397_vm1 = vcmask 123904  }
  0x18   : > { %s305_s18 = scalar_lea.vmem %s967_s1, %s295_s15  ;;  %s604_s27 = sshll.u32 %s295_s15, 3  ;;  %v372_v5 = vld [vmem:[%s970_s4] sm:$0x3] }
  0x19   : > { %s301_s12 = scalar_lea.vmem %s966_s0, %s604_s27  ;;  %375 = vperm.xlu0 %671, %v372_v5   ;;  %v672_v8 = vld [vmem:[%s305_s18] ss:$0 sm:$0xff]  ;;  %s601_s18 = sshll.u32 %s779_s24, 1 }
  0x1a   : > { %v605_v4 = vld [vmem:[%s301_s12] sm:$0xff]  ;;  %s439_s28 = scalar_lea.hbm %s971_s5, %s601_s18  ;;  %s424_s12 = scalar_lea.sflag [#allocation3], %s910_s17 }
  0x1b   : > { %359 = vmatpush.bf16.msra.mxu0 %v608_v1  ;;  %v370_v16 = vld [vmem:[%s969_s3] sm:$0x1]  ;;  %s443_s11 = sshll.u32 %s439_s28, 4  ;;  %s697_s18 = scalar_lea.hbm %s971_s5, 4  ;;  %s444_s11 = int_to_ptr.hbm [resolvable:$true] %s443_s11 }
  0x1c   : > { %s691_s13 = sshra.s32 %s444_s11, 4  ;;  %s692_s13 = int_to_ptr.hbm [resolvable:$true] %s691_s13 }
  0x1d   : > { %s693_s14 = scalar_lea.hbm %s692_s13, 2  ;;  %p698_p1 = scmp.lt.s32.totalorder %s692_s13, %s971_s5 }
  0x1e   : > { %p694_p12 = scmp.ne.s32.totalorder %s692_s13, %s693_s14  ;;  %p699_p2 = scmp.lt.s32.totalorder %s697_s18, %s693_s14 }
  0x1f   : > { %360 = vmatpush.bf16.msra.mxu0 %v607_v2 }
  0x20   : > { %p695_p13 = pnand %p694_p12, %p865_p4  ;;  %p700_p3 = por %p699_p2, %p698_p1 }
  0x22   : > { %p696_p0 = pneg %p695_p13 }
  0x23   : > { %361 = vmatpush.bf16.msra.mxu0 %v606_v3 }
  0x24   : > { %p701_p5 = pnand %p700_p3, %p696_p0 }
  0x26   : > { %598 = vmatmul.msk.bf16.vlgmr.msra.gmra.mxu0 %vm350_vm0, %v605_v4 }
  0x8b   : > { %v376_v17 = vpop.permute.xlu0 %375 }
  0xa3   : > { %v363_v7 = vpop.f32.mrf.mxu0 }
  0xa4   : > { %v364_v9 = vadd.f32 %v672_v8, %v363_v7 }
  0xa6   : > { %v368_v12 = vmax.f32 %v364_v9, 0.0 }
  0xab   : > { %v365_v10 = vpop.f32.mrf.mxu0 }
  0xac   : > { %v366_v11 = vadd.f32 %v672_v8, %v365_v10 }
  0xae   : > { %v369_v13 = vmax.f32 %v366_v11, 0.0 }
  0xb0   : > { %v371_v14 = vpack.c.bf16 %v369_v13, %v368_v12 }
  0xb2   : > { %v382_v15 = vsel %vm350_vm0, %v371_v14, 0 }
  0xb3   : > { %391 = vmatpush.bf16.xpose.msra.mxu1 %v382_v15 }
  0xba   : > { %599 = vmatmul.msk.bf16.vlgmr.msra.gmra.mxu1 %vm350_vm0, %v370_v16 }
 0x137   : > { %v393_v18 = vpop.f32.mrf.mxu1 }
 0x138   : > { %v394_v19 = vadd.f32 %v393_v18, %v376_v17 }
 0x13a   : > { %v400_v20 = vrot.slane %v394_v19, 1  ;;  %398 = vst.msk [vmem:[%s286_s30] sm:$0x3] %vm397_vm1, %v394_v19 }
 0x13b   : > { %704 = shalt.err (!%p701_p5)
}
 0x13c   : > { %610 = dma.vmem_to_hbm [thread:$0]  (%p865_p4), %s442_s8, 32, %s444_s11, %s424_s12   ;;  %v402_v21 = vsub.f32 %v394_v19, %v400_v20  ;;  %vm421_vm5 = vcmask 122880  }
 0x13d   : > { %s453_s30 = scalar_lea.hbm %s972_s6, %s779_s24  ;;  %s292_s8 = scalar_lea.vmem [#allocation4], %s910_s17 }
 0x13e   : > { %v403_v22 = vmul.f32 1.442695, %v402_v21  ;;  %s455_s11 = sshll.u32 %s292_s8, 4  ;;  %s457_s12 = sshll.u32 %s453_s30, 4  ;;  %s456_s11 = int_to_ptr.vmem [resolvable:$true] %s455_s11  ;;  %s458_s12 = int_to_ptr.hbm [resolvable:$true] %s457_s12 }
 0x13f   : > { %v395_v23 = vpop.f32.mrf.mxu1  ;;  %s429_s24 = scalar_lea.sflag [#allocation5], %s910_s17  ;;  %s719_s13 = sshra.s32 %s458_s12, 4  ;;  %s720_s13 = int_to_ptr.hbm [resolvable:$true] %s719_s13 }
 0x140   : > { %673 = vpow2.f32 %v403_v22  ;;  %s721_s14 = scalar_lea.hbm %s720_s13, 1  ;;  %s725_s18 = scalar_lea.hbm %s972_s6, 2 }
 0x141   : > { %p722_p6 = scmp.ne.s32.totalorder %s720_s13, %s721_s14  ;;  %p726_p10 = scmp.lt.s32.totalorder %s720_s13, %s972_s6 }
 0x142   : > { %p727_p11 = scmp.lt.s32.totalorder %s725_s18, %s721_s14 }
 0x143   : > { %p723_p7 = pnand %p722_p6, %p865_p4 }
 0x144   : > { %p728_p12 = por %p727_p11, %p726_p10 }
 0x145   : > { %p724_p9 = pneg %p723_p7 }
 0x146   : > { %v674_v24 = vpop.eup %673 }
 0x147   : > { %v405_v25 = vadd.f32 1.0, %v674_v24  ;;  %p729_p13 = pnand %p728_p12, %p724_p9 }
 0x149   : > { %675 = vrcp.f32 %v405_v25  ;;  %v417_v29 = vand.u32 2147483648, %v405_v25  ;;  %v415_v31 = vand.u32 2147483647, %v405_v25  ;;  %vm411_vm3 = vweird.f32 %v405_v25 }
 0x14b   : > { %v418_v33 = vor.u32 1.1754944e-38, %v417_v29  ;;  %vm416_vm6 = vcmp.eq.f32.partialorder %v415_v31, 8.507059e+37 }
 0x14f   : > { %v676_v26 = vpop.eup %675 }
 0x150   : > { %v407_v27 = vmul.f32 %v676_v26, %v405_v25  ;;  %vm412_vm2 = vweird.f32 %v676_v26 }
 0x151   : > { %vm413_vm4 = vmor %vm411_vm3, %vm412_vm2 }
 0x152   : > { %v408_v28 = vsub.f32 1.0, %v407_v27 }
 0x154   : > { %v409_v30 = vmul.f32 %v676_v26, %v408_v28 }
 0x156   : > { %v410_v32 = vadd.f32 %v676_v26, %v409_v30 }
 0x158   : > { %v414_v34 = vsel %vm413_vm4, %v676_v26, %v410_v32 }
 0x159   : > { %v419_v35 = vsel %vm416_vm6, %v418_v33, %v414_v34 }
 0x15a   : > { %422 = vst.msk [vmem:[%s292_s8] sm:$0x1] %vm421_vm5, %v419_v35 }
 0x15b   : > { %732 = shalt.err (!%p729_p13)
}
 0x15c   : > { %611 = dma.vmem_to_hbm [thread:$0]  (%p865_p4), %s456_s11, 16, %s458_s12, %s429_s24  }
 0x15d PF: > { %p621_p0 = scmp.ge.s32.totalorder %s787_s26, 2  ;;  %s469_s17 = sand.u32 1, %s767_s21  }
 0x15e   : > { %s470_s27 = scalar_lea.sflag [#allocation3], %s469_s17 }
 0x15f   : > { %p615_p1 = pnand %p621_p0, %p872_p8 }
 0x161   : > { %p616_p2 = pneg %p615_p1 }
 0x163   : > { %758 = dma.done.wait (%p616_p2), %s470_s27, 32  }
 0x164   : > { %760 = vsyncadd (%p616_p2), %s470_s27, 4294967264  ;;  %s480_s28 = scalar_lea.sflag [#allocation5], %s469_s17 }
 0x165   : > { %762 = dma.done.wait (%p616_p2), %s480_s28, 16  }
 0x166   : > { %764 = vsyncadd (%p616_p2), %s480_s28, 4294967280  ;;  %s23_s26 = sadd.s32 1, %s787_s26   ;;  %s975_s21 = smov %s771_s22 }
 0x167   : > { %p20_p3 = scmp.ge.s32.totalorder %s23_s26, 4   ;;  %s976_s22 = smov %s775_s23 }
 0x168   : > { %s977_s23 = smov %s878_s10  ;;  %s978_s24 = smov %s783_s25 }
 0x169   : > { %s979_s25 = smov %s981_s29  ;;  %22 = sbr.rel (!%p20_p3) target bundleno = 6 (0x6), region = 95 }
 0x16e   :  { %485 = vsyncpa [#allocation3], 1 }
 0x16f   :  { %487 = vsyncpa [#allocation3 + $0x1], 1 }
 0x170   :  { %488 = vsyncpa [#allocation5], 1 }
 0x171   :  { %490 = vsyncpa [#allocation5 + $0x1], 1 }

</bundles_post_ra>
